<compile_context>
chip_gen: v7x
topology: tpu7x:2x2x1
jax: 0.10.0
libtpu: 0.0.40
codegen_flags: <defaults>
</compile_context>

<pallas_src>
import functools

import jax
import jax.numpy as jnp
from jax.experimental import pallas as pl
from jax.experimental.pallas import tpu as pltpu


def _round_up(x, m):
    return ((x + m - 1) // m) * m


def _style_vq_kernel(seq_len, z_ref, w_ref, wsq_ref, zq_ref, idx_ref, sse_ref):
    """One (batch, L-tile) block of the style-VQ forward.

    Inputs:
      z_ref   : (1, e_dim, TL) f32  encoder-output tile (native channels-first)
      w_ref   : (n_e, e_dim)   f32  style-modulated codebook (resident)
      wsq_ref : (n_e, 1)       f32  0.5 * ||w||^2 per code row (resident)
    Outputs (per tile):
      zq_ref  : (1, e_dim, TL) f32  quantized vectors (channels-first)
      idx_ref : (1, 1, 1, TL)  i32  argmin code index per column (lane-dense)
      sse_ref : (1, 1, 1, TL)  f32  per-column sum_e (z_q - z)^2 (lane-dense)
    """
    n_e = w_ref.shape[0]
    e_dim = w_ref.shape[1]
    tl = z_ref.shape[-1]

    z = z_ref[0]                                                       # (e_dim, TL)
    w = w_ref[...]                                                     # (n_e, e_dim)

    # Reduced distance 0.5*||w||^2 - w.z  (||z||^2 is constant per column and
    # the 0.5 positive scale does not change the argmin).
    cross = jax.lax.dot_general(w, z, (((1,), (0,)), ((), ())),
                                preferred_element_type=jnp.float32)    # (n_e, TL)
    d = wsq_ref[...] - cross                                           # (n_e, TL)

    # First-index argmin along the codebook (sublane) axis == torch.argmin.
    row_ids = jax.lax.broadcasted_iota(jnp.int32, (n_e, tl), 0)
    d_min = jnp.min(d, axis=0, keepdims=True)                          # (1, TL)
    idx = jnp.min(jnp.where(d == d_min, row_ids, jnp.int32(n_e)),
                  axis=0, keepdims=True)                               # (1, TL) i32
    onehot = (row_ids == idx).astype(jnp.float32)                      # (n_e, TL)

    # Exact codebook-row selection, emitted directly in (e_dim, TL) layout.
    zq = jax.lax.dot_general(w, onehot, (((0,), (0,)), ((), ())),
                             preferred_element_type=jnp.float32)       # (e_dim, TL)

    zq_ref[0] = zq
    idx_ref[...] = idx.reshape(1, 1, 1, tl)

    # Per-column squared-error partial.  Only the reduced (1, TL) row is masked
    # for L-padding columns (padded z columns are zero, zq is a real codeword),
    # so there is no full-tile validity multiply.
    diff = zq - z
    sse = jnp.sum(diff * diff, axis=0, keepdims=True)                  # (1, TL)
    col = jax.lax.broadcasted_iota(jnp.int32, (1, tl), 1) + pl.program_id(1) * tl
    sse_ref[...] = jnp.where(col < seq_len, sse, 0.0).reshape(1, 1, 1, tl)


def _tile_plan(L, n_e, e_dim):
    """Pick the L tile so the full per-tile working set fits VMEM comfortably."""
    bp = 4  # f32 bytes
    # Resident: w + 0.5*||w||^2 (budget 2 buffers in case Buffered(1) is unused).
    resident = 2 * bp * n_e * (e_dim + 1)
    # Per output column: z + zq double-buffered streams, ~3 (n_e, TL) f32
    # intermediates (cross / d / onehot), plus idx + sse rows.
    per_col = bp * (4 * e_dim + 3 * n_e + 8)
    budget = 20 << 20  # target working set; safe under v7x's 64 MiB VMEM
    tl_cap = max(128, (budget - resident) // per_col)
    tl_cap = max(128, min(2048, (tl_cap // 128) * 128))
    if L <= tl_cap:
        tl, l_pad = L, L                       # single tile, no L padding needed
    else:
        tl = tl_cap
        l_pad = _round_up(L, tl)
    est_bytes = resident + per_col * tl + (1 << 20)
    return tl, l_pad, l_pad // tl, est_bytes


def style_vq_forward(z, style_token, emb_w, pos_w, neg_w, beta):
    """JAX wrapper mirroring StyleTransferVectorQuantizer.forward (values only)."""
    B, e_dim, L = z.shape
    n_e = emb_w.shape[0]
    N = B * L
    f32 = jnp.float32

    # Style modulation + distance bias hoisted out of the kernel (tiny ops).
    s = style_token.astype(f32)[0, 0]
    w = emb_w.astype(f32) * (s * pos_w.astype(f32) + (1.0 - s) * neg_w.astype(f32))
    wsq_half = 0.5 * jnp.sum(w * w, axis=1, keepdims=True)             # (n_e, 1)

    tl, l_pad, n_lt, est_bytes = _tile_plan(L, n_e, e_dim)

    z_in = z.astype(f32)
    if l_pad > L:
        z_in = jnp.pad(z_in, ((0, 0), (0, 0), (0, l_pad - L)))

    # Generation-aware scoped-VMEM limit (stay well below physical VMEM).
    try:
        phys_vmem = pltpu.get_tpu_info().vmem_capacity_bytes
    except Exception:
        phys_vmem = 64 << 20  # assume the smallest (v7x per-core) VMEM
    vmem_limit = int(max(32 << 20, min(phys_vmem * 3 // 4, 2 * est_bytes)))

    kernel = functools.partial(_style_vq_kernel, L)
    out_shape = (
        jax.ShapeDtypeStruct((B, e_dim, l_pad), f32),        # z_q (channels-first)
        jax.ShapeDtypeStruct((B, n_lt, 1, tl), jnp.int32),   # argmin indices
        jax.ShapeDtypeStruct((B, n_lt, 1, tl), f32),         # per-column sq-err
    )

    def build(resident_mode):
        def res_spec(shape):
            imap = lambda b, l: (0,) * len(shape)
            if resident_mode is None:
                return pl.BlockSpec(shape, imap)
            return pl.BlockSpec(shape, imap, pipeline_mode=resident_mode)

        in_specs = [
            pl.BlockSpec((1, e_dim, tl), lambda b, l: (b, 0, l)),   # z (streamed)
            res_spec((n_e, e_dim)),                                 # w (resident)
            res_spec((n_e, 1)),                                     # 0.5*||w||^2
        ]
        out_specs = (
            pl.BlockSpec((1, e_dim, tl), lambda b, l: (b, 0, l)),
            pl.BlockSpec((1, 1, 1, tl), lambda b, l: (b, l, 0, 0)),
            pl.BlockSpec((1, 1, 1, tl), lambda b, l: (b, l, 0, 0)),
        )
        return pl.pallas_call(
            kernel,
            out_shape=out_shape,
            grid=(B, n_lt),
            in_specs=in_specs,
            out_specs=out_specs,
            compiler_params=pltpu.CompilerParams(
                dimension_semantics=("parallel", "parallel"),
                vmem_limit_bytes=vmem_limit),
        )

    try:
        # Single-buffer the resident (never-changing) codebook operands.
        zq_p, idx_t, sse_t = build(pl.Buffered(1))(z_in, w, wsq_half)
    except Exception:
        # Fallback if this JAX build rejects Buffered(1) on an input BlockSpec.
        zq_p, idx_t, sse_t = build(None)(z_in, w, wsq_half)

    z_q = zq_p[:, :, :L] if l_pad > L else zq_p

    # Tiny finalizations kept outside so the grid stays fully parallel.
    mse = jnp.sum(sse_t) / jnp.float32(N * e_dim)
    loss = (1.0 + float(beta)) * mse

    idx_flat = idx_t.reshape(B, l_pad)[:, :L].reshape(N)
    min_idx = idx_flat[:, None].astype(jnp.int32)                     # (N, 1)
    min_enc = jax.nn.one_hot(idx_flat, n_e, dtype=f32)                # returned anyway
    e_mean = jnp.sum(min_enc, axis=0) / jnp.float32(N)
    perplexity = jnp.exp(-jnp.sum(e_mean * jnp.log(e_mean + 1e-10)))

    # TODO(synk): straight-through gradient semantics (z + (z_q - z).detach())
    # are a training-time autodiff concern; the forward value equals z_q.
    return z_q, loss, (perplexity, min_enc, min_idx)


def _ref_forward(z, style_token, emb_w, pos_w, neg_w, beta):
    """Pure-JAX reference of the PyTorch forward (forward values only)."""
    B, e_dim, L = z.shape
    n_e = emb_w.shape[0]
    s = style_token[0, 0]
    w = emb_w * (s * pos_w + (1.0 - s) * neg_w)
    zf = jnp.transpose(z, (0, 2, 1)).reshape(-1, e_dim)
    d = (jnp.sum(zf ** 2, axis=1, keepdims=True)
         + jnp.sum(w ** 2, axis=1)
         - 2.0 * zf @ w.T)
    idx = jnp.argmin(d, axis=1)
    onehot = jax.nn.one_hot(idx, n_e, dtype=jnp.float32)
    zq = onehot @ w
    loss = (1.0 + beta) * jnp.mean((zq - zf) ** 2)
    e_mean = jnp.mean(onehot, axis=0)
    perp = jnp.exp(-jnp.sum(e_mean * jnp.log(e_mean + 1e-10)))
    z_q = jnp.transpose(zq.reshape(B, L, e_dim), (0, 2, 1))
    return z_q, loss, perp, onehot, idx[:, None].astype(jnp.int32)


if __name__ == "__main__":
    # Small shapes consistent with the module: z = (batch, channel=e_dim, seq).
    B, e_dim, L = 2, 4, 16
    n_e = 16
    beta = 0.25

    key = jax.random.PRNGKey(0)
    k_z, k_emb, k_pos, k_neg = jax.random.split(key, 4)

    z = jax.random.normal(k_z, (B, e_dim, L), dtype=jnp.float32)
    # embedding.weight ~ U(-1/n_e, 1/n_e); positive/negative ~ N(0, 1)
    emb_w = jax.random.uniform(k_emb, (n_e, e_dim), minval=-1.0 / n_e,
                               maxval=1.0 / n_e, dtype=jnp.float32)
    pos_w = jax.random.normal(k_pos, (n_e, e_dim), dtype=jnp.float32)
    neg_w = jax.random.normal(k_neg, (n_e, e_dim), dtype=jnp.float32)
    style_token = jnp.ones((1, 1), dtype=jnp.float32)  # "positive" style

    z_q, loss, (perp, min_enc, min_idx) = style_vq_forward(
        z, style_token, emb_w, pos_w, neg_w, beta)
    jax.block_until_ready((z_q, loss, perp, min_enc, min_idx))

    # Correctness check against a pure-JAX reference.
    r_zq, r_loss, r_perp, r_enc, r_idx = _ref_forward(
        z, style_token, emb_w, pos_w, neg_w, beta)
    assert jnp.allclose(z_q, r_zq, atol=1e-5, rtol=1e-5)
    assert jnp.allclose(loss, r_loss, atol=1e-5, rtol=1e-5)
    assert jnp.allclose(perp, r_perp, atol=1e-5, rtol=1e-5)
    assert jnp.array_equal(min_enc, r_enc)
    assert jnp.array_equal(min_idx.astype(jnp.int32), r_idx)

    print("KERNEL_OK")
</pallas_src>

<mosaic_0001>
module attributes {stable_mosaic.version = 11 : i64} {
  func.func @_style_vq_kernel(%arg0: i32, %arg1: i32, %arg2: memref<1x4x16xf32, #tpu.memory_space<vmem>>, %arg3: memref<16x4xf32, #tpu.memory_space<vmem>>, %arg4: memref<16x1xf32, #tpu.memory_space<vmem>>, %arg5: memref<1x4x16xf32, #tpu.memory_space<vmem>>, %arg6: memref<1x1x1x16xi32, #tpu.memory_space<vmem>>, %arg7: memref<1x1x1x16xf32, #tpu.memory_space<vmem>>) attributes {dimension_semantics = [#tpu.dimension_semantics<parallel>, #tpu.dimension_semantics<parallel>], iteration_bounds = array<i64: 2, 1>, scalar_prefetch = 0 : i64, scratch_operands = 0 : i64, tpu.core_type = #tpu.core_type<tc>, window_params = [{transform_indices = @transform_0, window_bounds = array<i64: 1, 4, 16>}, {pipeline_mode = #tpu.pipeline_mode<synchronous>, transform_indices = @transform_1, window_bounds = array<i64: 16, 4>}, {pipeline_mode = #tpu.pipeline_mode<synchronous>, transform_indices = @transform_2, window_bounds = array<i64: 16, 1>}, {transform_indices = @transform_3, window_bounds = array<i64: 1, 4, 16>}, {transform_indices = @transform_4, window_bounds = array<i64: 1, 1, 1, 16>}, {transform_indices = @transform_5, window_bounds = array<i64: 1, 1, 1, 16>}]} {
    %c0 = arith.constant 0 : index
    %c0_0 = arith.constant 0 : index
    %c0_1 = arith.constant 0 : index
    %0 = vector.load %arg2[%c0, %c0_0, %c0_1] : memref<1x4x16xf32, #tpu.memory_space<vmem>>, vector<1x4x16xf32>
    %1 = vector.shape_cast %0 : vector<1x4x16xf32> to vector<4x16xf32>
    %c0_2 = arith.constant 0 : index
    %c0_3 = arith.constant 0 : index
    %2 = vector.load %arg3[%c0_2, %c0_3] : memref<16x4xf32, #tpu.memory_space<vmem>>, vector<16x4xf32>
    %cst = arith.constant dense<0.000000e+00> : vector<16x16xf32>
    %3 = tpu.matmul %2, %1, %cst {dimension_numbers = #tpu.dot_dimension_numbers<[1], [0], [0], [1], [0, 0, 1, 1], [], []>} : vector<16x4xf32>, vector<4x16xf32>, vector<16x16xf32> -> vector<16x16xf32>
    %c0_4 = arith.constant 0 : index
    %c0_5 = arith.constant 0 : index
    %4 = vector.load %arg4[%c0_4, %c0_5] : memref<16x1xf32, #tpu.memory_space<vmem>>, vector<16x1xf32>
    %5 = vector.broadcast %4 : vector<16x1xf32> to vector<16x16xf32>
    %6 = arith.subf %5, %3 : vector<16x16xf32>
    %7 = tpu.iota {dimensions = array<i32: 0>} : vector<16x16xi32>
    %cst_6 = arith.constant dense<0x7F800000> : vector<16xf32>
    %8 = vector.multi_reduction <minimumf>, %6, %cst_6 [0] : vector<16x16xf32> to vector<16xf32>
    %9 = vector.shape_cast %8 : vector<16xf32> to vector<1x16xf32>
    %10 = vector.broadcast %9 : vector<1x16xf32> to vector<16x16xf32>
    %11 = arith.cmpf oeq, %6, %10 : vector<16x16xf32>
    %c16_i32 = arith.constant 16 : i32
    %12 = vector.broadcast %c16_i32 : i32 to vector<16x16xi32>
    %13 = arith.select %11, %7, %12 : vector<16x16xi1>, vector<16x16xi32>
    %cst_7 = arith.constant dense<2147483647> : vector<16xi32>
    %14 = vector.multi_reduction <minsi>, %13, %cst_7 [0] : vector<16x16xi32> to vector<16xi32>
    %15 = vector.shape_cast %14 : vector<16xi32> to vector<1x16xi32>
    %16 = vector.broadcast %15 : vector<1x16xi32> to vector<16x16xi32>
    %17 = arith.cmpi eq, %7, %16 : vector<16x16xi32>
    %18 = arith.extui %17 : vector<16x16xi1> to vector<16x16xi32>
    %19 = arith.sitofp %18 : vector<16x16xi32> to vector<16x16xf32>
    %cst_8 = arith.constant dense<0.000000e+00> : vector<4x16xf32>
    %20 = tpu.matmul %2, %19, %cst_8 {dimension_numbers = #tpu.dot_dimension_numbers<[0], [0], [1], [1], [0, 1, 1, 1], [], []>} : vector<16x4xf32>, vector<16x16xf32>, vector<4x16xf32> -> vector<4x16xf32>
    %c0_9 = arith.constant 0 : index
    %c0_10 = arith.constant 0 : index
    %c0_11 = arith.constant 0 : index
    %21 = vector.load %arg5[%c0_9, %c0_10, %c0_11] : memref<1x4x16xf32, #tpu.memory_space<vmem>>, vector<1x4x16xf32>
    %22 = vector.shape_cast %21 : vector<1x4x16xf32> to vector<4x16xf32>
    %23 = vector.shape_cast %20 : vector<4x16xf32> to vector<1x4x16xf32>
    tpu.vector_store %arg5[%c0_9, %c0_10, %c0_11], %23 {strides = array<i32>} : memref<1x4x16xf32, #tpu.memory_space<vmem>>, vector<1x4x16xf32>,
    %24 = vector.shape_cast %15 : vector<1x16xi32> to vector<1x1x1x16xi32>
    %c0_12 = arith.constant 0 : index
    %c0_13 = arith.constant 0 : index
    %c0_14 = arith.constant 0 : index
    %c0_15 = arith.constant 0 : index
    %25 = vector.load %arg6[%c0_12, %c0_13, %c0_14, %c0_15] : memref<1x1x1x16xi32, #tpu.memory_space<vmem>>, vector<1x1x1x16xi32>
    tpu.vector_store %arg6[%c0_12, %c0_13, %c0_14, %c0_15], %24 {strides = array<i32>} : memref<1x1x1x16xi32, #tpu.memory_space<vmem>>, vector<1x1x1x16xi32>,
    %26 = arith.subf %20, %1 : vector<4x16xf32>
    %27 = arith.mulf %26, %26 : vector<4x16xf32>
    %cst_16 = arith.constant dense<0.000000e+00> : vector<16xf32>
    %28 = vector.multi_reduction <add>, %27, %cst_16 [0] : vector<4x16xf32> to vector<16xf32>
    %29 = vector.shape_cast %28 : vector<16xf32> to vector<1x16xf32>
    %30 = tpu.iota {dimensions = array<i32: 1>} : vector<1x16xi32>
    %c16_i32_17 = arith.constant 16 : i32
    %31 = arith.muli %arg1, %c16_i32_17 : i32
    %32 = vector.broadcast %31 : i32 to vector<1x16xi32>
    %33 = arith.addi %30, %32 : vector<1x16xi32>
    %c16_i32_18 = arith.constant 16 : i32
    %34 = vector.broadcast %c16_i32_18 : i32 to vector<1x16xi32>
    %35 = arith.cmpi slt, %33, %34 : vector<1x16xi32>
    %cst_19 = arith.constant 0.000000e+00 : f32
    %36 = vector.broadcast %cst_19 : f32 to vector<1x16xf32>
    %37 = arith.select %35, %29, %36 : vector<1x16xi1>, vector<1x16xf32>
    %38 = vector.shape_cast %37 : vector<1x16xf32> to vector<1x1x1x16xf32>
    %c0_20 = arith.constant 0 : index
    %c0_21 = arith.constant 0 : index
    %c0_22 = arith.constant 0 : index
    %c0_23 = arith.constant 0 : index
    %39 = vector.load %arg7[%c0_20, %c0_21, %c0_22, %c0_23] : memref<1x1x1x16xf32, #tpu.memory_space<vmem>>, vector<1x1x1x16xf32>
    tpu.vector_store %arg7[%c0_20, %c0_21, %c0_22, %c0_23], %38 {strides = array<i32>} : memref<1x1x1x16xf32, #tpu.memory_space<vmem>>, vector<1x1x1x16xf32>,
    return
  }
  func.func @transform_0(%arg0: i32, %arg1: i32) -> (i32, i32, i32) {
    %c0_i32 = arith.constant 0 : i32
    %c0_i32_0 = arith.constant 0 : i32
    return %arg0, %c0_i32, %arg1 : i32, i32, i32
  }
  func.func @transform_1(%arg0: i32, %arg1: i32) -> (i32, i32) {
    %c0_i32 = arith.constant 0 : i32
    %c0_i32_0 = arith.constant 0 : i32
    %c0_i32_1 = arith.constant 0 : i32
    return %c0_i32, %c0_i32_0 : i32, i32
  }
  func.func @transform_2(%arg0: i32, %arg1: i32) -> (i32, i32) {
    %c0_i32 = arith.constant 0 : i32
    %c0_i32_0 = arith.constant 0 : i32
    %c0_i32_1 = arith.constant 0 : i32
    return %c0_i32, %c0_i32_0 : i32, i32
  }
  func.func @transform_3(%arg0: i32, %arg1: i32) -> (i32, i32, i32) {
    %c0_i32 = arith.constant 0 : i32
    %c0_i32_0 = arith.constant 0 : i32
    return %arg0, %c0_i32, %arg1 : i32, i32, i32
  }
  func.func @transform_4(%arg0: i32, %arg1: i32) -> (i32, i32, i32, i32) {
    %c0_i32 = arith.constant 0 : i32
    %c0_i32_0 = arith.constant 0 : i32
    %c0_i32_1 = arith.constant 0 : i32
    return %arg0, %arg1, %c0_i32, %c0_i32_0 : i32, i32, i32, i32
  }
  func.func @transform_5(%arg0: i32, %arg1: i32) -> (i32, i32, i32, i32) {
    %c0_i32 = arith.constant 0 : i32
    %c0_i32_0 = arith.constant 0 : i32
    %c0_i32_1 = arith.constant 0 : i32
    return %arg0, %arg1, %c0_i32, %c0_i32_0 : i32, i32, i32, i32
  }
}

module attributes {stable_mosaic.version = 11 : i64} {
  func.func @_style_vq_kernel(%arg0: i32, %arg1: i32, %arg2: memref<1x4x16xf32, #tpu.memory_space<vmem>>, %arg3: memref<16x4xf32, #tpu.memory_space<vmem>>, %arg4: memref<16x1xf32, #tpu.memory_space<vmem>>, %arg5: memref<1x4x16xf32, #tpu.memory_space<vmem>>, %arg6: memref<1x1x1x16xi32, #tpu.memory_space<vmem>>, %arg7: memref<1x1x1x16xf32, #tpu.memory_space<vmem>>) attributes {dimension_semantics = [#tpu.dimension_semantics<parallel>, #tpu.dimension_semantics<parallel>], iteration_bounds = array<i64: 2, 1>, scalar_prefetch = 0 : i64, scratch_operands = 0 : i64, tpu.core_type = #tpu.core_type<tc>, window_params = [{transform_indices = @transform_0, window_bounds = array<i64: 1, 4, 16>}, {pipeline_mode = #tpu.pipeline_mode<synchronous>, transform_indices = @transform_1, window_bounds = array<i64: 16, 4>}, {pipeline_mode = #tpu.pipeline_mode<synchronous>, transform_indices = @transform_2, window_bounds = array<i64: 16, 1>}, {transform_indices = @transform_3, window_bounds = array<i64: 1, 4, 16>}, {transform_indices = @transform_4, window_bounds = array<i64: 1, 1, 1, 16>}, {transform_indices = @transform_5, window_bounds = array<i64: 1, 1, 1, 16>}]} {
    %c0 = arith.constant 0 : index
    %c0_0 = arith.constant 0 : index
    %c0_1 = arith.constant 0 : index
    %0 = vector.load %arg2[%c0, %c0_0, %c0_1] : memref<1x4x16xf32, #tpu.memory_space<vmem>>, vector<1x4x16xf32>
    %1 = vector.shape_cast %0 : vector<1x4x16xf32> to vector<4x16xf32>
    %c0_2 = arith.constant 0 : index
    %c0_3 = arith.constant 0 : index
    %2 = vector.load %arg3[%c0_2, %c0_3] : memref<16x4xf32, #tpu.memory_space<vmem>>, vector<16x4xf32>
    %cst = arith.constant dense<0.000000e+00> : vector<16x16xf32>
    %3 = tpu.matmul %2, %1, %cst {dimension_numbers = #tpu.dot_dimension_numbers<[1], [0], [0], [1], [0, 0, 1, 1], [], []>} : vector<16x4xf32>, vector<4x16xf32>, vector<16x16xf32> -> vector<16x16xf32>
    %c0_4 = arith.constant 0 : index
    %c0_5 = arith.constant 0 : index
    %4 = vector.load %arg4[%c0_4, %c0_5] : memref<16x1xf32, #tpu.memory_space<vmem>>, vector<16x1xf32>
    %5 = vector.broadcast %4 : vector<16x1xf32> to vector<16x16xf32>
    %6 = arith.subf %5, %3 : vector<16x16xf32>
    %7 = tpu.iota {dimensions = array<i32: 0>} : vector<16x16xi32>
    %cst_6 = arith.constant dense<0x7F800000> : vector<16xf32>
    %8 = vector.multi_reduction <minimumf>, %6, %cst_6 [0] : vector<16x16xf32> to vector<16xf32>
    %9 = vector.shape_cast %8 : vector<16xf32> to vector<1x16xf32>
    %10 = vector.broadcast %9 : vector<1x16xf32> to vector<16x16xf32>
    %11 = arith.cmpf oeq, %6, %10 : vector<16x16xf32>
    %c16_i32 = arith.constant 16 : i32
    %12 = vector.broadcast %c16_i32 : i32 to vector<16x16xi32>
    %13 = arith.select %11, %7, %12 : vector<16x16xi1>, vector<16x16xi32>
    %cst_7 = arith.constant dense<2147483647> : vector<16xi32>
    %14 = vector.multi_reduction <minsi>, %13, %cst_7 [0] : vector<16x16xi32> to vector<16xi32>
    %15 = vector.shape_cast %14 : vector<16xi32> to vector<1x16xi32>
    %16 = vector.broadcast %15 : vector<1x16xi32> to vector<16x16xi32>
    %17 = arith.cmpi eq, %7, %16 : vector<16x16xi32>
    %18 = arith.extui %17 : vector<16x16xi1> to vector<16x16xi32>
    %19 = arith.sitofp %18 : vector<16x16xi32> to vector<16x16xf32>
    %cst_8 = arith.constant dense<0.000000e+00> : vector<4x16xf32>
    %20 = tpu.matmul %2, %19, %cst_8 {dimension_numbers = #tpu.dot_dimension_numbers<[0], [0], [1], [1], [0, 1, 1, 1], [], []>} : vector<16x4xf32>, vector<16x16xf32>, vector<4x16xf32> -> vector<4x16xf32>
    %c0_9 = arith.constant 0 : index
    %c0_10 = arith.constant 0 : index
    %c0_11 = arith.constant 0 : index
    %21 = vector.load %arg5[%c0_9, %c0_10, %c0_11] : memref<1x4x16xf32, #tpu.memory_space<vmem>>, vector<1x4x16xf32>
    %22 = vector.shape_cast %21 : vector<1x4x16xf32> to vector<4x16xf32>
    %23 = vector.shape_cast %20 : vector<4x16xf32> to vector<1x4x16xf32>
    tpu.vector_store %arg5[%c0_9, %c0_10, %c0_11], %23 {strides = array<i32>} : memref<1x4x16xf32, #tpu.memory_space<vmem>>, vector<1x4x16xf32>,
    %24 = vector.shape_cast %15 : vector<1x16xi32> to vector<1x1x1x16xi32>
    %c0_12 = arith.constant 0 : index
    %c0_13 = arith.constant 0 : index
    %c0_14 = arith.constant 0 : index
    %c0_15 = arith.constant 0 : index
    %25 = vector.load %arg6[%c0_12, %c0_13, %c0_14, %c0_15] : memref<1x1x1x16xi32, #tpu.memory_space<vmem>>, vector<1x1x1x16xi32>
    tpu.vector_store %arg6[%c0_12, %c0_13, %c0_14, %c0_15], %24 {strides = array<i32>} : memref<1x1x1x16xi32, #tpu.memory_space<vmem>>, vector<1x1x1x16xi32>,
    %26 = arith.subf %20, %1 : vector<4x16xf32>
    %27 = arith.mulf %26, %26 : vector<4x16xf32>
    %cst_16 = arith.constant dense<0.000000e+00> : vector<16xf32>
    %28 = vector.multi_reduction <add>, %27, %cst_16 [0] : vector<4x16xf32> to vector<16xf32>
    %29 = vector.shape_cast %28 : vector<16xf32> to vector<1x16xf32>
    %30 = tpu.iota {dimensions = array<i32: 1>} : vector<1x16xi32>
    %c16_i32_17 = arith.constant 16 : i32
    %31 = arith.muli %arg1, %c16_i32_17 : i32
    %32 = vector.broadcast %31 : i32 to vector<1x16xi32>
    %33 = arith.addi %30, %32 : vector<1x16xi32>
    %c16_i32_18 = arith.constant 16 : i32
    %34 = vector.broadcast %c16_i32_18 : i32 to vector<1x16xi32>
    %35 = arith.cmpi slt, %33, %34 : vector<1x16xi32>
    %cst_19 = arith.constant 0.000000e+00 : f32
    %36 = vector.broadcast %cst_19 : f32 to vector<1x16xf32>
    %37 = arith.select %35, %29, %36 : vector<1x16xi1>, vector<1x16xf32>
    %38 = vector.shape_cast %37 : vector<1x16xf32> to vector<1x1x1x16xf32>
    %c0_20 = arith.constant 0 : index
    %c0_21 = arith.constant 0 : index
    %c0_22 = arith.constant 0 : index
    %c0_23 = arith.constant 0 : index
    %39 = vector.load %arg7[%c0_20, %c0_21, %c0_22, %c0_23] : memref<1x1x1x16xf32, #tpu.memory_space<vmem>>, vector<1x1x1x16xf32>
    tpu.vector_store %arg7[%c0_20, %c0_21, %c0_22, %c0_23], %38 {strides = array<i32>} : memref<1x1x1x16xf32, #tpu.memory_space<vmem>>, vector<1x1x1x16xf32>,
    return
  }
  func.func @transform_0(%arg0: i32, %arg1: i32) -> (i32, i32, i32) {
    %c0_i32 = arith.constant 0 : i32
    %c0_i32_0 = arith.constant 0 : i32
    return %arg0, %c0_i32, %arg1 : i32, i32, i32
  }
  func.func @transform_1(%arg0: i32, %arg1: i32) -> (i32, i32) {
    %c0_i32 = arith.constant 0 : i32
    %c0_i32_0 = arith.constant 0 : i32
    %c0_i32_1 = arith.constant 0 : i32
    return %c0_i32, %c0_i32_0 : i32, i32
  }
  func.func @transform_2(%arg0: i32, %arg1: i32) -> (i32, i32) {
    %c0_i32 = arith.constant 0 : i32
    %c0_i32_0 = arith.constant 0 : i32
    %c0_i32_1 = arith.constant 0 : i32
    return %c0_i32, %c0_i32_0 : i32, i32
  }
  func.func @transform_3(%arg0: i32, %arg1: i32) -> (i32, i32, i32) {
    %c0_i32 = arith.constant 0 : i32
    %c0_i32_0 = arith.constant 0 : i32
    return %arg0, %c0_i32, %arg1 : i32, i32, i32
  }
  func.func @transform_4(%arg0: i32, %arg1: i32) -> (i32, i32, i32, i32) {
    %c0_i32 = arith.constant 0 : i32
    %c0_i32_0 = arith.constant 0 : i32
    %c0_i32_1 = arith.constant 0 : i32
    return %arg0, %arg1, %c0_i32, %c0_i32_0 : i32, i32, i32, i32
  }
  func.func @transform_5(%arg0: i32, %arg1: i32) -> (i32, i32, i32, i32) {
    %c0_i32 = arith.constant 0 : i32
    %c0_i32_0 = arith.constant 0 : i32
    %c0_i32_1 = arith.constant 0 : i32
    return %arg0, %arg1, %c0_i32, %c0_i32_0 : i32, i32, i32, i32
  }
}

</mosaic_0001>

<bundles_post_ra>
// kernel: tpu_custom_call.1
= control target key start
LH: loop header
LB: loop body
LE: loop exit
PB: predicated region body
PF: predicated region fallthrough
CT: control target
= control target key end

     0   :  { %11 = vsyncpa [#allocation3], 0  ;;  %s1216_s0 = inlined_call_operand.vmem [shape: f32[2,4,16], index: 0, kind: input, shape index: {}]   ;;  %s1217_s1 = inlined_call_operand.vmem [shape: f32[16,4], index: 1, kind: input, shape index: {}]   ;;  %s1218_s2 = inlined_call_operand.vmem [shape: f32[16,1], index: 2, kind: input, shape index: {}]   ;;  %s1219_s3 = inlined_call_operand.hbm [shape: f32[2,4,16], index: 3, kind: output, shape index: {0}]   ;;  %s1220_s4 = inlined_call_operand.hbm [shape: s32[2,1,1,16], index: 4, kind: output, shape index: {1}]   ;;  %s1221_s5 = inlined_call_operand.hbm [shape: f32[2,1,1,16], index: 5, kind: output, shape index: {2}]  }
   0x1   :  { %13 = vsyncpa [#allocation3 + $0x1], 0 }
   0x2   :  { %14 = vsyncpa [#allocation5], 0 }
   0x3   :  { %16 = vsyncpa [#allocation5 + $0x1], 0  ;;  %s998_s18 = smov 0   ;;  %s1000_s19 = smov 0  }
   0x4   :  { %s1002_s20 = smov 0   ;;  %s1004_s21 = smov 0  }
   0x5   :  { %s1006_s22 = smov 0   ;;  %s1008_s23 = smov 0  }
   0x6 LB: > { %s707_s24 = sadd.s32 4294967295, %s958_s23   ;;  %s1222_s25 = sadd.s32 4294967294, %s958_s23   ;;  %s958_s23 = sphi %s1008_s23, %s22_s23   ;;  %s954_s22 = sphi %s1006_s22, %s1230_s22   ;;  %s950_s21 = sphi %s1004_s21, %s1229_s21   ;;  %s946_s20 = sphi %s1002_s20, %s1228_s20   ;;  %s942_s19 = sphi %s1000_s19, %s1227_s19   ;;  %s938_s18 = sphi %s998_s18, %s1226_s18  }
   0x7   : > { %s34_s26 = sadd.s32 1, %s954_s22  ;;  %s113_s27 = sadd.s32 1, %s946_s20 }
   0x8   : > { %p36_p0 = scmp.ge.s32.totalorder %s34_s26, 2  ;;  %p123_p1 = scmp.ne.s32.totalorder %s946_s20, %s942_s19 }
   0x9   : > { %p124_p2 = scmp.eq.s32.totalorder %s707_s24, 1  ;;  %p129_p3 = scmp.ne.s32.totalorder %s942_s19, %s938_s18 }
   0xa   : > { %s1232_s26 = smov (%p36_p0, %s34_s26), 0  ;;  %p130_p5 = scmp.eq.s32.totalorder %s1222_s25, 1 }
   0xb   : > { %p1040_p4 = por %p124_p2, %p123_p1  ;;  %s108_s29 = ssub.s32 %s954_s22, %s1232_s26 }
   0xc   : > { %p711_p6 = scmp.ge.s32.totalorder %s958_s23, 1  ;;  %p111_p7 = scmp.eq.s32.totalorder %s108_s29, 0 }
   0xd   : > { %p1049_p8 = por %p130_p5, %p129_p3  ;;  %p220_p9 = scmp.lt.s32.totalorder %s958_s23, 3 }
   0xe   : > { %s1055_s6 = scalar_select %p111_p7, %s946_s20, %s113_s27  }
   0xf   : > { %p221_p10 = pnand %p711_p6, %p220_p9 }
  0x10   : > { %p258_p11 = scmp.lt.s32.totalorder (!%p221_p10), %s950_s21, 1  ;;  %v266_v0 = vld [vmem:[%s1217_s1] sm:$0xff] (!%p221_p10)  ;;  %vm268_vm0 = vcmask (!%p221_p10), 31744   ;;  %v960_v1 = vmov (!%p221_p10), 0   ;;  %v355_v3 = vld [vmem:[%s1218_s2 + $0x8] sm:$0xff] (!%p221_p10)  ;;  %vm275_vm1 = vcmask (!%p221_p10), 1043456   ;;  %v368_v18 = vlaneseq (!%p221_p10) }
  0x11   : > { %224 = sbr.rel (%p221_p10) target bundleno = 538 (0x21a), region = 32  ;;  %736 = vmatprep.mubr.msk.f32.mxu0 (!%p221_p10), %vm268_vm0, %v266_v0  ;;  %819 = vset.pattern.permute.xlu0 (!%p221_p10), %v960_v1  ;;  %v354_v2 = vld [vmem:[%s1218_s2] sm:$0xff] (!%p221_p10)  ;;  %v267_v4 = vld [vmem:[%s1217_s1 + $0x8] sm:$0xff] (!%p221_p10)  ;;  %v961_v6 = vmov (!%p221_p10), 0.0|0.0   ;;  %vm962_vm2 = vmmov (!%p221_p10), 0   ;;  %v963_v7 = vmov (!%p221_p10), 0.0  }
  0x12   : > { %358 = vperm.xlu0 (!%p221_p10), %819, %v354_v2   ;;  %404 = vxpose.xlu1.b32.start [1/2] (short) (narrow) (!%p221_p10), %v266_v0, 8  ;;  %vm371_vm3 = vcmask (!%p221_p10), 130048   ;;  %v369_v21 = vshrl.u32 (!%p221_p10), %v368_v18, 7  ;;  %s1086_s7 = sand.u32 (!%p221_p10), 1, %s942_s19   ;;  %vm511_vm9 = vcmask (!%p221_p10), 122880   ;;  %s1093_s9 = sand.u32 (!%p221_p10), 1, %s707_s24  }
  0x13   : > { %746 = vmatprep.subr.bf16.mxu1 (!%p221_p10), %v961_v6  ;;  %743 = vmatprep.mubr.msk.f32.mxu1 (!%p221_p10), %vm962_vm2, %v963_v7  ;;  %s251_s8 = scalar_lea.vmem (!%p221_p10), [#allocation4], %s1086_s7  ;;  %v964_v37 = vmov (!%p221_p10), 1.0|1.0   ;;  %s724_s10 = sshll.u32 (!%p221_p10), %s950_s21, 4 }
  0x14   : > { %v370_v24 = vadd.s32 (!%p221_p10), 8, %v369_v21  ;;  %s1101_s13 = scalar_lea.hbm (!%p221_p10), %s1220_s4, %s724_s10  ;;  %s536_s15 = scalar_lea.sflag (!%p221_p10), [#allocation5], %s1093_s9 }
  0x16   : > { %363 = vperm.xlu0 (!%p221_p10), %819, %v355_v3   ;;  %405 = vxpose.xlu1.b32.end [2/2] (short) (narrow) (!%p221_p10), %v267_v4, 8 }
  0x18   : > { %s259_s11 = scalar_select %p258_p11, %s950_s21, 1 }
  0x1a   : > { %s713_s14 = sshll.u32 %s259_s11, 2 }
  0x1b   : > { %s264_s17 = scalar_lea.vmem %s1216_s0, %s713_s14  ;;  %s567_s14 = sshll.u32 %s251_s8, 4  ;;  %s568_s14 = int_to_ptr.vmem [resolvable:$true] %s567_s14 }
  0x1c   : > { %v1075_v5 = vld [vmem:[%s264_s17] sm:$0xf]  ;;  %s820_s16 = scalar_lea.vmem %s568_s14, 16  ;;  %s965_s17 = smov [#allocation4]  }
  0x1d   : > { %734 = vmatprep.subr.msk.mxu0 %vm275_vm1, %v1075_v5  ;;  %p821_p12 = scmp.ne.s32.totalorder %s568_s14, %s820_s16  ;;  %s824_s27 = sshll.u32 %s965_s17, 4  ;;  %s825_s27 = int_to_ptr.vmem [resolvable:$false] %s824_s27 }
  0x1e   : > { %735 = vmatpush3.msk.msra.mxu0 %vm275_vm1, %v1075_v5  ;;  %s826_s24 = scalar_lea.vmem %s825_s27, 32  ;;  %p827_p1 = scmp.lt.s32.totalorder %s568_s14, %s825_s27 }
  0x1f   : > { %737 = vmatmul.mubr.msk.f32.vlgmr.msra.gmra.mrb[0].mxu0 %vm268_vm0, %v267_v4  ;;  %p822_p13 = pnand %p821_p12, %p1040_p4  ;;  %p828_p2 = scmp.lt.s32.totalorder %s826_s24, %s820_s16 }
  0x21   : > { %p823_p0 = pneg %p822_p13  ;;  %p829_p3 = por %p828_p2, %p827_p1 }
  0x23   : > { %p830_p5 = pnand %p829_p3, %p823_p0 }
  0x91   : > { %v359_v8 = vpop.permute.xlu0 %358 }
  0x92   : > { %v420_v38 = vpop.trf.xlu1 }
  0x95   : > { %v364_v9 = vpop.permute.xlu0 %363 }
  0xf2   : > { %v738_v10 = vpop.f32.mrb[0].mxu0 }
  0xf3   : > { %v367_v11 = vsub.f32 %v364_v9, %v738_v10  ;;  %v345_v12 = vpop.f32.mrb[1].mxu0 }
  0xf4   : > { %v366_v13 = vsub.f32 %v359_v8, %v345_v12 }
  0xf5   : > { %v373_v14 = vsel %vm371_vm3, %v367_v11, inf }
  0xf6   : > { %v372_v15 = vsel %vm371_vm3, %v366_v13, inf }
  0xf7   : > { %v374_v16 = vmin.f32 %v372_v15, %v373_v14 }
  0xf9   : > { %v375_v17 = vrot.slane %v374_v16, 4 }
  0xfb   : > { %v376_v19 = vmin.f32 %v374_v16, %v375_v17 }
  0xfd   : > { %v377_v20 = vrot.slane %v376_v19, 2 }
  0xff   : > { %v378_v22 = vmin.f32 %v376_v19, %v377_v20 }
 0x101   : > { %v379_v23 = vrot.slane %v378_v22, 1 }
 0x103   : > { %v380_v25 = vmin.f32 %v378_v22, %v379_v23 }
 0x105   : > { %vm381_vm4 = vcmp.eq.f32.partialorder %v366_v13, %v380_v25  ;;  %vm382_vm5 = vcmp.eq.f32.partialorder %v367_v11, %v380_v25 }
 0x106   : > { %v383_v26 = vsel %vm381_vm4, %v369_v21, 16  ;;  %v384_v27 = vsel %vm382_vm5, %v370_v24, 16 }
 0x107   : > { %v385_v28 = vsel %vm371_vm3, %v383_v26, 2147483647  ;;  %v386_v29 = vsel %vm371_vm3, %v384_v27, 2147483647 }
 0x108   : > { %vm387_vm6 = vcmp.lt.s32.totalorder %v385_v28, %v386_v29 }
 0x109   : > { %v388_v30 = vsel %vm387_vm6, %v385_v28, %v386_v29 }
 0x10a   : > { %v389_v31 = vrot.slane %v388_v30, 4 }
 0x10c   : > { %vm390_vm7 = vcmp.lt.s32.totalorder %v388_v30, %v389_v31 }
 0x10d   : > { %v391_v32 = vsel %vm390_vm7, %v388_v30, %v389_v31 }
 0x10e   : > { %v392_v33 = vrot.slane %v391_v32, 2 }
 0x110   : > { %vm393_vm8 = vcmp.lt.s32.totalorder %v391_v32, %v392_v33 }
 0x111   : > { %v394_v34 = vsel %vm393_vm8, %v391_v32, %v392_v33 }
 0x112   : > { %v395_v35 = vrot.slane %v394_v34, 1 }
 0x114   : > { %vm396_vm10 = vcmp.lt.s32.totalorder %v394_v34, %v395_v35 }
 0x115   : > { %v397_v36 = vsel %vm396_vm10, %v394_v34, %v395_v35 }
 0x116   : > { %vm398_vm11 = vcmp.eq.s32.totalorder %v369_v21, %v397_v36  ;;  %vm399_vm12 = vcmp.eq.s32.totalorder %v370_v24, %v397_v36  ;;  %512 = vst.msk [vmem:[%s251_s8] sm:$0x1] %vm511_vm9, %v397_v36 }
 0x117   : > { %vm747_vm13 = vmpackc.low %vm399_vm12, %vm398_vm11 }
 0x118   : > { %748 = vmatpush3.bf16.msk.msra.mxu1 %vm747_vm13, %v964_v37 }
 0x11b   : > { %744 = vmatmul.mubr.msk.f32.vlgmr.msra.gmra.mrb[0].mxu1 %vm371_vm3, %v420_v38 }
 0x11c   : > { %833 = shalt.err (!%p830_p5)
}
 0x11d   : > { %s834_s29 = scalar_lea.hbm %s1101_s13, 16  ;;  %s838_s12 = scalar_lea.hbm %s1220_s4, 32 }
 0x11e   : > { %p835_p6 = scmp.ne.s32.totalorder %s1101_s13, %s834_s29  ;;  %p839_p10 = scmp.lt.u32.totalorder %s1101_s13, %s1220_s4 }
 0x11f   : > { %p840_p11 = scmp.lt.u32.totalorder %s838_s12, %s834_s29  ;;  %p842_p13 = scmp.lt.u32.totalorder %s834_s29, %s1101_s13 }
 0x120   : > { %p836_p7 = pnand %p835_p6, %p1040_p4 }
 0x121   : > { %p841_p12 = por %p840_p11, %p839_p10 }
 0x122   : > { %p837_p9 = pneg %p836_p7 }
 0x123   : > { %p843_p0 = por %p842_p13, %p841_p12 }
 0x125   : > { %p844_p1 = pnand %p843_p0, %p837_p9 }
 0x127   : > { %847 = shalt.err (!%p844_p1)
}
 0x128   : > { %750 = dma.vmem_to_hbm [thread:$0]  (%p1040_p4), %s568_s14, 16, %s1101_s13, %s536_s15   ;;  %vm509_vm14 = vcmask 125952  }
 0x129   : > { %s712_s16 = sshll.u32 %s1086_s7, 2  ;;  %s723_s24 = sshll.u32 %s950_s21, 6 }
 0x12a   : > { %s245_s8 = scalar_lea.vmem [#allocation2], %s712_s16  ;;  %s1128_s17 = scalar_lea.hbm %s1219_s3, %s723_s24 }
 0x12b   : > { %s553_s11 = sshll.u32 %s245_s8, 4  ;;  %s531_s13 = scalar_lea.sflag [#allocation3], %s1086_s7  ;;  %s1130_s11 = int_to_ptr.vmem [resolvable:$true] %s553_s11 }
 0x12c   : > { %s848_s14 = scalar_lea.vmem %s1130_s11, 64  ;;  %s966_s27 = smov [#allocation2]  }
 0x12d   : > { %p849_p2 = scmp.ne.s32.totalorder %s1130_s11, %s848_s14  ;;  %s852_s16 = sshll.u32 %s966_s27, 4  ;;  %s853_s16 = int_to_ptr.vmem [resolvable:$false] %s852_s16 }
 0x12e   : > { %s854_s24 = scalar_lea.vmem %s853_s16, 128  ;;  %p855_p6 = scmp.lt.s32.totalorder %s1130_s11, %s853_s16 }
 0x12f   : > { %p850_p3 = pnand %p849_p2, %p1040_p4  ;;  %p856_p7 = scmp.lt.s32.totalorder %s854_s24, %s848_s14 }
 0x131   : > { %p851_p5 = pneg %p850_p3  ;;  %p857_p9 = por %p856_p7, %p855_p6 }
 0x133   : > { %p858_p10 = pnand %p857_p9, %p851_p5 }
 0x1ee   : > { %v505_v39 = vpop.f32.mrb[0].mxu1 }
 0x1ef   : > { %510 = vst.msk [vmem:[%s245_s8] sm:$0xf] %vm509_vm14, %v505_v39  ;;  %v513_v40 = vsub.f32 %v505_v39, %v1075_v5  ;;  %v745_v41 = vpop.f32.mrb[1].mxu1 }
 0x1f0   : > { %861 = shalt.err (!%p858_p10)
}
 0x1f1   : > { %s862_s8 = scalar_lea.hbm %s1128_s17, 64  ;;  %s866_s27 = scalar_lea.hbm %s1219_s3, 128 }
 0x1f2   : > { %p863_p11 = scmp.ne.s32.totalorder %s1128_s17, %s862_s8  ;;  %p867_p0 = scmp.lt.u32.totalorder %s1128_s17, %s1219_s3 }
 0x1f3   : > { %p868_p1 = scmp.lt.u32.totalorder %s866_s27, %s862_s8  ;;  %p870_p3 = scmp.lt.u32.totalorder %s862_s8, %s1128_s17 }
 0x1f4   : > { %p864_p12 = pnand %p863_p11, %p1040_p4 }
 0x1f5   : > { %p869_p2 = por %p868_p1, %p867_p0 }
 0x1f6   : > { %p865_p13 = pneg %p864_p12 }
 0x1f7   : > { %p871_p5 = por %p870_p3, %p869_p2 }
 0x1f9   : > { %p872_p6 = pnand %p871_p5, %p865_p13 }
 0x1fb   : > { %875 = shalt.err (!%p872_p6)
}
 0x1fc   : > { %749 = dma.vmem_to_hbm [thread:$0]  (%p1040_p4), %s1130_s11, 64, %s1128_s17, %s531_s13   ;;  %v514_v42 = vmul.f32 %v513_v40, %v513_v40  ;;  %v523_v47 = vand.u32 127, %v368_v18 }
 0x1fd   : > { %s257_s25 = scalar_lea.vmem [#allocation6], %s1086_s7  ;;  %s1164_s11 = scalar_lea.hbm %s1221_s5, %s724_s10 }
 0x1fe   : > { %v515_v43 = vsel %vm509_vm14, %v514_v42, 0.0  ;;  %s581_s14 = sshll.u32 %s257_s25, 4  ;;  %vm527_vm15 = vcmp.lt.s32.totalorder %v523_v47, 16  ;;  %s967_s7 = smov [#allocation6]   ;;  %s1166_s14 = int_to_ptr.vmem [resolvable:$true] %s581_s14 }
 0x1ff   : > { %v516_v44 = vrot.slane %v515_v43, 4  ;;  %s876_s17 = scalar_lea.vmem %s1166_s14, 16  ;;  %s880_s21 = sshll.u32 %s967_s7, 4  ;;  %s881_s21 = int_to_ptr.vmem [resolvable:$false] %s880_s21 }
 0x200   : > { %p877_p7 = scmp.ne.s32.totalorder %s1166_s14, %s876_s17  ;;  %s882_s13 = scalar_lea.vmem %s881_s21, 32 }
 0x201   : > { %v517_v45 = vadd.f32 %v516_v44, %v515_v43  ;;  %p883_p11 = scmp.lt.s32.totalorder %s1166_s14, %s881_s21  ;;  %p884_p12 = scmp.lt.s32.totalorder %s882_s13, %s876_s17 }
 0x202   : > { %p878_p9 = pnand %p877_p7, %p1040_p4 }
 0x203   : > { %v518_v46 = vrot.slane %v517_v45, 2  ;;  %p885_p13 = por %p884_p12, %p883_p11 }
 0x204   : > { %p879_p10 = pneg %p878_p9 }
 0x205   : > { %v519_v48 = vadd.f32 %v518_v46, %v517_v45 }
 0x206   : > { %p886_p0 = pnand %p885_p13, %p879_p10 }
 0x207   : > { %v520_v49 = vrot.slane %v519_v48, 1 }
 0x209   : > { %v521_v50 = vadd.f32 %v520_v49, %v519_v48 }
 0x20b   : > { %v528_v51 = vsel %vm527_vm15, %v521_v50, 0.0 }
 0x20c   : > { %529 = vst.msk [vmem:[%s257_s25] sm:$0x1] %vm511_vm9, %v528_v51 }
 0x20d   : > { %889 = shalt.err (!%p886_p0)
}
 0x20e   : > { %s890_s10 = scalar_lea.hbm %s1164_s11, 16  ;;  %s894_s27 = scalar_lea.hbm %s1221_s5, 32 }
 0x20f   : > { %p891_p1 = scmp.ne.s32.totalorder %s1164_s11, %s890_s10  ;;  %p895_p5 = scmp.lt.u32.totalorder %s1164_s11, %s1221_s5 }
 0x210   : > { %p896_p6 = scmp.lt.u32.totalorder %s894_s27, %s890_s10  ;;  %p898_p9 = scmp.lt.u32.totalorder %s890_s10, %s1164_s11 }
 0x211   : > { %p892_p2 = pnand %p891_p1, %p1040_p4 }
 0x212   : > { %p897_p7 = por %p896_p6, %p895_p5 }
 0x213   : > { %p893_p3 = pneg %p892_p2 }
 0x214   : > { %p899_p10 = por %p898_p9, %p897_p7 }
 0x216   : > { %p900_p11 = pnand %p899_p10, %p893_p3 }
 0x218   : > { %903 = shalt.err (!%p900_p11)
}
 0x219   : > { %751 = dma.vmem_to_hbm [thread:$0]  (%p1040_p4), %s1166_s14, 16, %s1164_s11, %s536_s15  }
 0x21a PF: > { %p765_p12 = scmp.ge.s32.totalorder %s958_s23, 2  ;;  %s593_s24 = sand.u32 1, %s938_s18  }
 0x21b   : > { %s594_s8 = scalar_lea.sflag [#allocation3], %s593_s24 }
 0x21c   : > { %p756_p13 = pnand %p765_p12, %p1049_p8 }
 0x21e   : > { %929 = dma.done.wait (!%p756_p13), %s594_s8, 64  }
 0x21f   : > { %931 = vsyncadd (!%p756_p13), %s594_s8, 4294967232  ;;  %s1225_s17 = sadd.s32 4294967294, %s958_s23  }
 0x220   : > { %s602_s7 = sand.u32 1, %s1225_s17  }
 0x221   : > { %s603_s28 = scalar_lea.sflag [#allocation5], %s602_s7 }
 0x222   : > { %933 = dma.done.wait (!%p756_p13), %s603_s28, 32  }
 0x223   : > { %935 = vsyncadd (!%p756_p13), %s603_s28, 4294967264  ;;  %s22_s23 = sadd.s32 1, %s958_s23   ;;  %s1226_s18 = smov %s942_s19 }
 0x224   : > { %p19_p4 = scmp.ge.s32.totalorder %s22_s23, 4   ;;  %s1227_s19 = smov %s946_s20 }
 0x225   : > { %s1228_s20 = smov %s1055_s6  ;;  %s1229_s21 = smov %s954_s22 }
 0x226   : > { %s1230_s22 = smov %s1232_s26  ;;  %21 = sbr.rel (!%p19_p4) target bundleno = 6 (0x6), region = 99 }
 0x22d   :  { %615 = vsyncpa [#allocation3], 1 }
 0x22e   :  { %617 = vsyncpa [#allocation3 + $0x1], 1 }
 0x22f   :  { %618 = vsyncpa [#allocation5], 1 }
 0x230   :  { %620 = vsyncpa [#allocation5 + $0x1], 1 }

// kernel: tpu_custom_call.1
= control target key start
LH: loop header
LB: loop body
LE: loop exit
PB: predicated region body
PF: predicated region fallthrough
CT: control target
= control target key end

     0   :  { %11 = vsyncpa [#allocation3], 0  ;;  %s1216_s0 = inlined_call_operand.vmem [shape: f32[2,4,16], index: 0, kind: input, shape index: {}]   ;;  %s1217_s1 = inlined_call_operand.vmem [shape: f32[16,4], index: 1, kind: input, shape index: {}]   ;;  %s1218_s2 = inlined_call_operand.vmem [shape: f32[16,1], index: 2, kind: input, shape index: {}]   ;;  %s1219_s3 = inlined_call_operand.hbm [shape: f32[2,4,16], index: 3, kind: output, shape index: {0}]   ;;  %s1220_s4 = inlined_call_operand.hbm [shape: s32[2,1,1,16], index: 4, kind: output, shape index: {1}]   ;;  %s1221_s5 = inlined_call_operand.hbm [shape: f32[2,1,1,16], index: 5, kind: output, shape index: {2}]  }
   0x1   :  { %13 = vsyncpa [#allocation3 + $0x1], 0 }
   0x2   :  { %14 = vsyncpa [#allocation5], 0 }
   0x3   :  { %16 = vsyncpa [#allocation5 + $0x1], 0  ;;  %s998_s18 = smov 0   ;;  %s1000_s19 = smov 0  }
   0x4   :  { %s1002_s20 = smov 0   ;;  %s1004_s21 = smov 0  }
   0x5   :  { %s1006_s22 = smov 0   ;;  %s1008_s23 = smov 0  }
   0x6 LB: > { %s707_s24 = sadd.s32 4294967295, %s958_s23   ;;  %s1222_s25 = sadd.s32 4294967294, %s958_s23   ;;  %s958_s23 = sphi %s1008_s23, %s22_s23   ;;  %s954_s22 = sphi %s1006_s22, %s1230_s22   ;;  %s950_s21 = sphi %s1004_s21, %s1229_s21   ;;  %s946_s20 = sphi %s1002_s20, %s1228_s20   ;;  %s942_s19 = sphi %s1000_s19, %s1227_s19   ;;  %s938_s18 = sphi %s998_s18, %s1226_s18  }
   0x7   : > { %s34_s26 = sadd.s32 1, %s954_s22  ;;  %s113_s27 = sadd.s32 1, %s946_s20 }
   0x8   : > { %p36_p0 = scmp.ge.s32.totalorder %s34_s26, 2  ;;  %p123_p1 = scmp.ne.s32.totalorder %s946_s20, %s942_s19 }
   0x9   : > { %p124_p2 = scmp.eq.s32.totalorder %s707_s24, 1  ;;  %p129_p3 = scmp.ne.s32.totalorder %s942_s19, %s938_s18 }
   0xa   : > { %s1232_s26 = smov (%p36_p0, %s34_s26), 0  ;;  %p130_p5 = scmp.eq.s32.totalorder %s1222_s25, 1 }
   0xb   : > { %p1040_p4 = por %p124_p2, %p123_p1  ;;  %s108_s29 = ssub.s32 %s954_s22, %s1232_s26 }
   0xc   : > { %p711_p6 = scmp.ge.s32.totalorder %s958_s23, 1  ;;  %p111_p7 = scmp.eq.s32.totalorder %s108_s29, 0 }
   0xd   : > { %p1049_p8 = por %p130_p5, %p129_p3  ;;  %p220_p9 = scmp.lt.s32.totalorder %s958_s23, 3 }
   0xe   : > { %s1055_s6 = scalar_select %p111_p7, %s946_s20, %s113_s27  }
   0xf   : > { %p221_p10 = pnand %p711_p6, %p220_p9 }
  0x10   : > { %p258_p11 = scmp.lt.s32.totalorder (!%p221_p10), %s950_s21, 1  ;;  %v266_v0 = vld [vmem:[%s1217_s1] sm:$0xff] (!%p221_p10)  ;;  %vm268_vm0 = vcmask (!%p221_p10), 31744   ;;  %v960_v1 = vmov (!%p221_p10), 0   ;;  %v355_v3 = vld [vmem:[%s1218_s2 + $0x8] sm:$0xff] (!%p221_p10)  ;;  %vm275_vm1 = vcmask (!%p221_p10), 1043456   ;;  %v368_v18 = vlaneseq (!%p221_p10) }
  0x11   : > { %224 = sbr.rel (%p221_p10) target bundleno = 538 (0x21a), region = 32  ;;  %736 = vmatprep.mubr.msk.f32.mxu0 (!%p221_p10), %vm268_vm0, %v266_v0  ;;  %819 = vset.pattern.permute.xlu0 (!%p221_p10), %v960_v1  ;;  %v354_v2 = vld [vmem:[%s1218_s2] sm:$0xff] (!%p221_p10)  ;;  %v267_v4 = vld [vmem:[%s1217_s1 + $0x8] sm:$0xff] (!%p221_p10)  ;;  %v961_v6 = vmov (!%p221_p10), 0.0|0.0   ;;  %vm962_vm2 = vmmov (!%p221_p10), 0   ;;  %v963_v7 = vmov (!%p221_p10), 0.0  }
  0x12   : > { %358 = vperm.xlu0 (!%p221_p10), %819, %v354_v2   ;;  %404 = vxpose.xlu1.b32.start [1/2] (short) (narrow) (!%p221_p10), %v266_v0, 8  ;;  %vm371_vm3 = vcmask (!%p221_p10), 130048   ;;  %v369_v21 = vshrl.u32 (!%p221_p10), %v368_v18, 7  ;;  %s1086_s7 = sand.u32 (!%p221_p10), 1, %s942_s19   ;;  %vm511_vm9 = vcmask (!%p221_p10), 122880   ;;  %s1093_s9 = sand.u32 (!%p221_p10), 1, %s707_s24  }
  0x13   : > { %746 = vmatprep.subr.bf16.mxu1 (!%p221_p10), %v961_v6  ;;  %743 = vmatprep.mubr.msk.f32.mxu1 (!%p221_p10), %vm962_vm2, %v963_v7  ;;  %s251_s8 = scalar_lea.vmem (!%p221_p10), [#allocation4], %s1086_s7  ;;  %v964_v37 = vmov (!%p221_p10), 1.0|1.0   ;;  %s724_s10 = sshll.u32 (!%p221_p10), %s950_s21, 4 }
  0x14   : > { %v370_v24 = vadd.s32 (!%p221_p10), 8, %v369_v21  ;;  %s1101_s13 = scalar_lea.hbm (!%p221_p10), %s1220_s4, %s724_s10  ;;  %s536_s15 = scalar_lea.sflag (!%p221_p10), [#allocation5], %s1093_s9 }
  0x16   : > { %363 = vperm.xlu0 (!%p221_p10), %819, %v355_v3   ;;  %405 = vxpose.xlu1.b32.end [2/2] (short) (narrow) (!%p221_p10), %v267_v4, 8 }
  0x18   : > { %s259_s11 = scalar_select %p258_p11, %s950_s21, 1 }
  0x1a   : > { %s713_s14 = sshll.u32 %s259_s11, 2 }
  0x1b   : > { %s264_s17 = scalar_lea.vmem %s1216_s0, %s713_s14  ;;  %s567_s14 = sshll.u32 %s251_s8, 4  ;;  %s568_s14 = int_to_ptr.vmem [resolvable:$true] %s567_s14 }
  0x1c   : > { %v1075_v5 = vld [vmem:[%s264_s17] sm:$0xf]  ;;  %s820_s16 = scalar_lea.vmem %s568_s14, 16  ;;  %s965_s17 = smov [#allocation4]  }
  0x1d   : > { %734 = vmatprep.subr.msk.mxu0 %vm275_vm1, %v1075_v5  ;;  %p821_p12 = scmp.ne.s32.totalorder %s568_s14, %s820_s16  ;;  %s824_s27 = sshll.u32 %s965_s17, 4  ;;  %s825_s27 = int_to_ptr.vmem [resolvable:$false] %s824_s27 }
  0x1e   : > { %735 = vmatpush3.msk.msra.mxu0 %vm275_vm1, %v1075_v5  ;;  %s826_s24 = scalar_lea.vmem %s825_s27, 32  ;;  %p827_p1 = scmp.lt.s32.totalorder %s568_s14, %s825_s27 }
  0x1f   : > { %737 = vmatmul.mubr.msk.f32.vlgmr.msra.gmra.mrb[0].mxu0 %vm268_vm0, %v267_v4  ;;  %p822_p13 = pnand %p821_p12, %p1040_p4  ;;  %p828_p2 = scmp.lt.s32.totalorder %s826_s24, %s820_s16 }
  0x21   : > { %p823_p0 = pneg %p822_p13  ;;  %p829_p3 = por %p828_p2, %p827_p1 }
  0x23   : > { %p830_p5 = pnand %p829_p3, %p823_p0 }
  0x91   : > { %v359_v8 = vpop.permute.xlu0 %358 }
  0x92   : > { %v420_v38 = vpop.trf.xlu1 }
  0x95   : > { %v364_v9 = vpop.permute.xlu0 %363 }
  0xf2   : > { %v738_v10 = vpop.f32.mrb[0].mxu0 }
  0xf3   : > { %v367_v11 = vsub.f32 %v364_v9, %v738_v10  ;;  %v345_v12 = vpop.f32.mrb[1].mxu0 }
  0xf4   : > { %v366_v13 = vsub.f32 %v359_v8, %v345_v12 }
  0xf5   : > { %v373_v14 = vsel %vm371_vm3, %v367_v11, inf }
  0xf6   : > { %v372_v15 = vsel %vm371_vm3, %v366_v13, inf }
  0xf7   : > { %v374_v16 = vmin.f32 %v372_v15, %v373_v14 }
  0xf9   : > { %v375_v17 = vrot.slane %v374_v16, 4 }
  0xfb   : > { %v376_v19 = vmin.f32 %v374_v16, %v375_v17 }
  0xfd   : > { %v377_v20 = vrot.slane %v376_v19, 2 }
  0xff   : > { %v378_v22 = vmin.f32 %v376_v19, %v377_v20 }
 0x101   : > { %v379_v23 = vrot.slane %v378_v22, 1 }
 0x103   : > { %v380_v25 = vmin.f32 %v378_v22, %v379_v23 }
 0x105   : > { %vm381_vm4 = vcmp.eq.f32.partialorder %v366_v13, %v380_v25  ;;  %vm382_vm5 = vcmp.eq.f32.partialorder %v367_v11, %v380_v25 }
 0x106   : > { %v383_v26 = vsel %vm381_vm4, %v369_v21, 16  ;;  %v384_v27 = vsel %vm382_vm5, %v370_v24, 16 }
 0x107   : > { %v385_v28 = vsel %vm371_vm3, %v383_v26, 2147483647  ;;  %v386_v29 = vsel %vm371_vm3, %v384_v27, 2147483647 }
 0x108   : > { %vm387_vm6 = vcmp.lt.s32.totalorder %v385_v28, %v386_v29 }
 0x109   : > { %v388_v30 = vsel %vm387_vm6, %v385_v28, %v386_v29 }
 0x10a   : > { %v389_v31 = vrot.slane %v388_v30, 4 }
 0x10c   : > { %vm390_vm7 = vcmp.lt.s32.totalorder %v388_v30, %v389_v31 }
 0x10d   : > { %v391_v32 = vsel %vm390_vm7, %v388_v30, %v389_v31 }
 0x10e   : > { %v392_v33 = vrot.slane %v391_v32, 2 }
 0x110   : > { %vm393_vm8 = vcmp.lt.s32.totalorder %v391_v32, %v392_v33 }
 0x111   : > { %v394_v34 = vsel %vm393_vm8, %v391_v32, %v392_v33 }
 0x112   : > { %v395_v35 = vrot.slane %v394_v34, 1 }
 0x114   : > { %vm396_vm10 = vcmp.lt.s32.totalorder %v394_v34, %v395_v35 }
 0x115   : > { %v397_v36 = vsel %vm396_vm10, %v394_v34, %v395_v35 }
 0x116   : > { %vm398_vm11 = vcmp.eq.s32.totalorder %v369_v21, %v397_v36  ;;  %vm399_vm12 = vcmp.eq.s32.totalorder %v370_v24, %v397_v36  ;;  %512 = vst.msk [vmem:[%s251_s8] sm:$0x1] %vm511_vm9, %v397_v36 }
 0x117   : > { %vm747_vm13 = vmpackc.low %vm399_vm12, %vm398_vm11 }
 0x118   : > { %748 = vmatpush3.bf16.msk.msra.mxu1 %vm747_vm13, %v964_v37 }
 0x11b   : > { %744 = vmatmul.mubr.msk.f32.vlgmr.msra.gmra.mrb[0].mxu1 %vm371_vm3, %v420_v38 }
 0x11c   : > { %833 = shalt.err (!%p830_p5)
}
 0x11d   : > { %s834_s29 = scalar_lea.hbm %s1101_s13, 16  ;;  %s838_s12 = scalar_lea.hbm %s1220_s4, 32 }
 0x11e   : > { %p835_p6 = scmp.ne.s32.totalorder %s1101_s13, %s834_s29  ;;  %p839_p10 = scmp.lt.u32.totalorder %s1101_s13, %s1220_s4 }
 0x11f   : > { %p840_p11 = scmp.lt.u32.totalorder %s838_s12, %s834_s29  ;;  %p842_p13 = scmp.lt.u32.totalorder %s834_s29, %s1101_s13 }
 0x120   : > { %p836_p7 = pnand %p835_p6, %p1040_p4 }
 0x121   : > { %p841_p12 = por %p840_p11, %p839_p10 }
 0x122   : > { %p837_p9 = pneg %p836_p7 }
 0x123   : > { %p843_p0 = por %p842_p13, %p841_p12 }
 0x125   : > { %p844_p1 = pnand %p843_p0, %p837_p9 }
 0x127   : > { %847 = shalt.err (!%p844_p1)
}
 0x128   : > { %750 = dma.vmem_to_hbm [thread:$0]  (%p1040_p4), %s568_s14, 16, %s1101_s13, %s536_s15   ;;  %vm509_vm14 = vcmask 125952  }
 0x129   : > { %s712_s16 = sshll.u32 %s1086_s7, 2  ;;  %s723_s24 = sshll.u32 %s950_s21, 6 }
 0x12a   : > { %s245_s8 = scalar_lea.vmem [#allocation2], %s712_s16  ;;  %s1128_s17 = scalar_lea.hbm %s1219_s3, %s723_s24 }
 0x12b   : > { %s553_s11 = sshll.u32 %s245_s8, 4  ;;  %s531_s13 = scalar_lea.sflag [#allocation3], %s1086_s7  ;;  %s1130_s11 = int_to_ptr.vmem [resolvable:$true] %s553_s11 }
 0x12c   : > { %s848_s14 = scalar_lea.vmem %s1130_s11, 64  ;;  %s966_s27 = smov [#allocation2]  }
 0x12d   : > { %p849_p2 = scmp.ne.s32.totalorder %s1130_s11, %s848_s14  ;;  %s852_s16 = sshll.u32 %s966_s27, 4  ;;  %s853_s16 = int_to_ptr.vmem [resolvable:$false] %s852_s16 }
 0x12e   : > { %s854_s24 = scalar_lea.vmem %s853_s16, 128  ;;  %p855_p6 = scmp.lt.s32.totalorder %s1130_s11, %s853_s16 }
 0x12f   : > { %p850_p3 = pnand %p849_p2, %p1040_p4  ;;  %p856_p7 = scmp.lt.s32.totalorder %s854_s24, %s848_s14 }
 0x131   : > { %p851_p5 = pneg %p850_p3  ;;  %p857_p9 = por %p856_p7, %p855_p6 }
 0x133   : > { %p858_p10 = pnand %p857_p9, %p851_p5 }
 0x1ee   : > { %v505_v39 = vpop.f32.mrb[0].mxu1 }
 0x1ef   : > { %510 = vst.msk [vmem:[%s245_s8] sm:$0xf] %vm509_vm14, %v505_v39  ;;  %v513_v40 = vsub.f32 %v505_v39, %v1075_v5  ;;  %v745_v41 = vpop.f32.mrb[1].mxu1 }
 0x1f0   : > { %861 = shalt.err (!%p858_p10)
}
 0x1f1   : > { %s862_s8 = scalar_lea.hbm %s1128_s17, 64  ;;  %s866_s27 = scalar_lea.hbm %s1219_s3, 128 }
 0x1f2   : > { %p863_p11 = scmp.ne.s32.totalorder %s1128_s17, %s862_s8  ;;  %p867_p0 = scmp.lt.u32.totalorder %s1128_s17, %s1219_s3 }
 0x1f3   : > { %p868_p1 = scmp.lt.u32.totalorder %s866_s27, %s862_s8  ;;  %p870_p3 = scmp.lt.u32.totalorder %s862_s8, %s1128_s17 }
 0x1f4   : > { %p864_p12 = pnand %p863_p11, %p1040_p4 }
 0x1f5   : > { %p869_p2 = por %p868_p1, %p867_p0 }
 0x1f6   : > { %p865_p13 = pneg %p864_p12 }
 0x1f7   : > { %p871_p5 = por %p870_p3, %p869_p2 }
 0x1f9   : > { %p872_p6 = pnand %p871_p5, %p865_p13 }
 0x1fb   : > { %875 = shalt.err (!%p872_p6)
}
 0x1fc   : > { %749 = dma.vmem_to_hbm [thread:$0]  (%p1040_p4), %s1130_s11, 64, %s1128_s17, %s531_s13   ;;  %v514_v42 = vmul.f32 %v513_v40, %v513_v40  ;;  %v523_v47 = vand.u32 127, %v368_v18 }
 0x1fd   : > { %s257_s25 = scalar_lea.vmem [#allocation6], %s1086_s7  ;;  %s1164_s11 = scalar_lea.hbm %s1221_s5, %s724_s10 }
 0x1fe   : > { %v515_v43 = vsel %vm509_vm14, %v514_v42, 0.0  ;;  %s581_s14 = sshll.u32 %s257_s25, 4  ;;  %vm527_vm15 = vcmp.lt.s32.totalorder %v523_v47, 16  ;;  %s967_s7 = smov [#allocation6]   ;;  %s1166_s14 = int_to_ptr.vmem [resolvable:$true] %s581_s14 }
 0x1ff   : > { %v516_v44 = vrot.slane %v515_v43, 4  ;;  %s876_s17 = scalar_lea.vmem %s1166_s14, 16  ;;  %s880_s21 = sshll.u32 %s967_s7, 4  ;;  %s881_s21 = int_to_ptr.vmem [resolvable:$false] %s880_s21 }
 0x200   : > { %p877_p7 = scmp.ne.s32.totalorder %s1166_s14, %s876_s17  ;;  %s882_s13 = scalar_lea.vmem %s881_s21, 32 }
 0x201   : > { %v517_v45 = vadd.f32 %v516_v44, %v515_v43  ;;  %p883_p11 = scmp.lt.s32.totalorder %s1166_s14, %s881_s21  ;;  %p884_p12 = scmp.lt.s32.totalorder %s882_s13, %s876_s17 }
 0x202   : > { %p878_p9 = pnand %p877_p7, %p1040_p4 }
 0x203   : > { %v518_v46 = vrot.slane %v517_v45, 2  ;;  %p885_p13 = por %p884_p12, %p883_p11 }
 0x204   : > { %p879_p10 = pneg %p878_p9 }
 0x205   : > { %v519_v48 = vadd.f32 %v518_v46, %v517_v45 }
 0x206   : > { %p886_p0 = pnand %p885_p13, %p879_p10 }
 0x207   : > { %v520_v49 = vrot.slane %v519_v48, 1 }
 0x209   : > { %v521_v50 = vadd.f32 %v520_v49, %v519_v48 }
 0x20b   : > { %v528_v51 = vsel %vm527_vm15, %v521_v50, 0.0 }
 0x20c   : > { %529 = vst.msk [vmem:[%s257_s25] sm:$0x1] %vm511_vm9, %v528_v51 }
 0x20d   : > { %889 = shalt.err (!%p886_p0)
}
 0x20e   : > { %s890_s10 = scalar_lea.hbm %s1164_s11, 16  ;;  %s894_s27 = scalar_lea.hbm %s1221_s5, 32 }
 0x20f   : > { %p891_p1 = scmp.ne.s32.totalorder %s1164_s11, %s890_s10  ;;  %p895_p5 = scmp.lt.u32.totalorder %s1164_s11, %s1221_s5 }
 0x210   : > { %p896_p6 = scmp.lt.u32.totalorder %s894_s27, %s890_s10  ;;  %p898_p9 = scmp.lt.u32.totalorder %s890_s10, %s1164_s11 }
 0x211   : > { %p892_p2 = pnand %p891_p1, %p1040_p4 }
 0x212   : > { %p897_p7 = por %p896_p6, %p895_p5 }
 0x213   : > { %p893_p3 = pneg %p892_p2 }
 0x214   : > { %p899_p10 = por %p898_p9, %p897_p7 }
 0x216   : > { %p900_p11 = pnand %p899_p10, %p893_p3 }
 0x218   : > { %903 = shalt.err (!%p900_p11)
}
 0x219   : > { %751 = dma.vmem_to_hbm [thread:$0]  (%p1040_p4), %s1166_s14, 16, %s1164_s11, %s536_s15  }
 0x21a PF: > { %p765_p12 = scmp.ge.s32.totalorder %s958_s23, 2  ;;  %s593_s24 = sand.u32 1, %s938_s18  }
 0x21b   : > { %s594_s8 = scalar_lea.sflag [#allocation3], %s593_s24 }
 0x21c   : > { %p756_p13 = pnand %p765_p12, %p1049_p8 }
 0x21e   : > { %929 = dma.done.wait (!%p756_p13), %s594_s8, 64  }
 0x21f   : > { %931 = vsyncadd (!%p756_p13), %s594_s8, 4294967232  ;;  %s1225_s17 = sadd.s32 4294967294, %s958_s23  }
 0x220   : > { %s602_s7 = sand.u32 1, %s1225_s17  }
 0x221   : > { %s603_s28 = scalar_lea.sflag [#allocation5], %s602_s7 }
 0x222   : > { %933 = dma.done.wait (!%p756_p13), %s603_s28, 32  }
 0x223   : > { %935 = vsyncadd (!%p756_p13), %s603_s28, 4294967264  ;;  %s22_s23 = sadd.s32 1, %s958_s23   ;;  %s1226_s18 = smov %s942_s19 }
 0x224   : > { %p19_p4 = scmp.ge.s32.totalorder %s22_s23, 4   ;;  %s1227_s19 = smov %s946_s20 }
 0x225   : > { %s1228_s20 = smov %s1055_s6  ;;  %s1229_s21 = smov %s954_s22 }
 0x226   : > { %s1230_s22 = smov %s1232_s26  ;;  %21 = sbr.rel (!%p19_p4) target bundleno = 6 (0x6), region = 99 }
 0x22d   :  { %615 = vsyncpa [#allocation3], 1 }
 0x22e   :  { %617 = vsyncpa [#allocation3 + $0x1], 1 }
 0x22f   :  { %618 = vsyncpa [#allocation5], 1 }
 0x230   :  { %620 = vsyncpa [#allocation5 + $0x1], 1 }

</bundles_post_ra>
